<compile_context>
chip_gen: v7x
topology: tpu7x:2x2x1
jax: 0.10.0
libtpu: 0.0.40
codegen_flags: <defaults>
</compile_context>

<pallas_src>
import jax
import jax.numpy as jnp
from jax.experimental import pallas as pl
from jax.experimental.pallas import tpu as pltpu


def _attention_block_kernel(g_ref, x_ref, wg_ref, wx_ref, bs_ref, wp_ref,
                            bp_ref, psi_ref, npsi_ref):
    # g_ref : (F_g, TL)      x_ref : (F_l, TL)        (L on lanes)
    # wg_ref: (F_int, F_g)   wx_ref: (F_int, F_l)     (BN already folded)
    # bs_ref: (F_int, 1)     combined bias bg + bx (f32)
    # wp_ref: (F_int, 1)     final 1x1-conv weight (BN folded, f32)
    # bp_ref: (1, 1) in SMEM final bias (BN folded)
    # psi_ref / npsi_ref: (1, TL)
    s = (jnp.dot(wg_ref[...], g_ref[...], preferred_element_type=jnp.float32)
         + jnp.dot(wx_ref[...], x_ref[...], preferred_element_type=jnp.float32)
         + bs_ref[...])                                   # (F_int, TL), f32
    # F.leaky_relu(..., negative_slope=0.2): for slope < 1, max(s, 0.2*s).
    act = jnp.maximum(s, 0.2 * s)
    # Final 1x1 conv as a lane-dense sublane reduce (avoid N=1 MXU matmul).
    p = jnp.sum(act * wp_ref[...], axis=0, keepdims=True) + bp_ref[0, 0]
    p = jax.nn.sigmoid(p)                                 # (1, TL)
    psi_ref[...] = p.astype(psi_ref.dtype)
    npsi_ref[...] = (1.0 - p).astype(npsi_ref.dtype)


def _fold_bn(w, b, gamma, beta, mean, var, eps=1e-5):
    """Fold eval-mode BatchNorm1d into a 1x1 conv (weight w:(Cout,Cin), bias b:(Cout,))."""
    scale = gamma / jnp.sqrt(var + eps)          # (Cout,)
    w_f = w * scale[:, None]                     # (Cout, Cin)
    b_f = (b - mean) * scale + beta              # (Cout,)
    return w_f, b_f


def _round_up(x, m):
    return ((x + m - 1) // m) * m


def _choose_tile_l(L, F_g, F_l, F_int, in_bytes):
    """Lane-tile size: big enough to amortize per-step overhead, small enough for VMEM."""
    l128 = _round_up(L, 128)
    # Target ~2 MiB of streamed g/x per grid step.
    t = (2 * 1024 * 1024) // max(1, (F_g + F_l) * in_bytes)
    # Double-buffered input blocks + f32 intermediates (s / act / act*wp) must stay
    # comfortably under the smallest default scoped VMEM limit (v5e: 16 MiB).
    bytes_per_col = 2 * (F_g + F_l) * in_bytes + 3 * F_int * 4 + 16
    t = min(t, (10 * 1024 * 1024) // max(1, bytes_per_col))
    t = max(128, min(t, 32768))
    t = (t // 128) * 128
    return min(t, l128)


def attention_block_forward(g, x, params, *, tile_l=None, input_dtype=jnp.bfloat16):
    """g: (B, F_g, L), x: (B, F_l, L)  ->  (psi, 1-psi) each (B, 1, L).

    input_dtype: dtype used to stream g/x and the gate weights through HBM.
                 Default bf16 (halves HBM traffic; f32 accumulation preserved).
                 Use jnp.float32 for bit-exact validation.
    """
    B, F_g, L = g.shape
    _, F_l, _ = x.shape

    # Fold BN (eval mode) into the three 1x1 convs.
    wg, bg = _fold_bn(params["wg"], params["bg"], params["gn_g_gamma"], params["gn_g_beta"],
                      params["gn_g_mean"], params["gn_g_var"])
    wx, bx = _fold_bn(params["wx"], params["bx"], params["gn_x_gamma"], params["gn_x_beta"],
                      params["gn_x_mean"], params["gn_x_var"])
    wp, bp = _fold_bn(params["wp"], params["bp"], params["gn_p_gamma"], params["gn_p_beta"],
                      params["gn_p_mean"], params["gn_p_var"])

    F_int = wg.shape[0]
    in_bytes = jnp.dtype(input_dtype).itemsize

    if tile_l is None:
        tile_l = _choose_tile_l(L, F_g, F_l, F_int, in_bytes)
    tile_l = max(128, _round_up(tile_l, 128))

    # Only pad up to the next multiple of 128 (no full tile_l padding). For the
    # common case L % 128 == 0 this is a no-op: no HBM copies, no output slice.
    L_pad = _round_up(L, 128)
    tile_l = min(tile_l, L_pad)

    # v7x megacore: make sure the parallel grid has >= 2 steps when possible.
    if B * pl.cdiv(L_pad, tile_l) < 2 and L_pad > 128:
        tile_l = max(128, _round_up(pl.cdiv(L_pad, 2), 128))

    g_in = g.astype(input_dtype)
    x_in = x.astype(input_dtype)
    if L_pad != L:
        g_in = jnp.pad(g_in, ((0, 0), (0, 0), (0, L_pad - L)))
        x_in = jnp.pad(x_in, ((0, 0), (0, 0), (0, L_pad - L)))

    wg_k = wg.astype(input_dtype)                             # (F_int, F_g)
    wx_k = wx.astype(input_dtype)                             # (F_int, F_l)
    bs_k = (bg + bx).reshape(F_int, 1).astype(jnp.float32)    # combined gate bias
    wp_k = jnp.transpose(wp).astype(jnp.float32)              # (F_int, 1)
    bp_k = bp.reshape(1, 1).astype(jnp.float32)               # scalar, lives in SMEM

    grid = (B, pl.cdiv(L_pad, tile_l))

    cost = pl.CostEstimate(
        flops=2 * B * L * F_int * (F_g + F_l) + 4 * B * L * F_int,
        transcendentals=B * L,
        bytes_accessed=(B * L * (F_g + F_l) * in_bytes
                        + (F_int * (F_g + F_l)) * in_bytes
                        + 2 * B * L * 4),
    )

    psi_pad, npsi_pad = pl.pallas_call(
        _attention_block_kernel,
        out_shape=(jax.ShapeDtypeStruct((B, 1, L_pad), jnp.float32),
                   jax.ShapeDtypeStruct((B, 1, L_pad), jnp.float32)),
        grid_spec=pltpu.PrefetchScalarGridSpec(
            num_scalar_prefetch=0,
            grid=grid,
            in_specs=[
                pl.BlockSpec((None, F_g, tile_l), lambda b, l: (b, 0, l)),   # g
                pl.BlockSpec((None, F_l, tile_l), lambda b, l: (b, 0, l)),   # x
                pl.BlockSpec((F_int, F_g), lambda b, l: (0, 0)),             # Wg
                pl.BlockSpec((F_int, F_l), lambda b, l: (0, 0)),             # Wx
                pl.BlockSpec((F_int, 1), lambda b, l: (0, 0)),               # bg+bx
                pl.BlockSpec((F_int, 1), lambda b, l: (0, 0)),               # Wpsi
                pl.BlockSpec(memory_space=pltpu.MemorySpace.SMEM),           # bpsi
            ],
            out_specs=[
                pl.BlockSpec((None, 1, tile_l), lambda b, l: (b, 0, l)),     # psi
                pl.BlockSpec((None, 1, tile_l), lambda b, l: (b, 0, l)),     # 1-psi
            ],
        ),
        compiler_params=pltpu.CompilerParams(
            dimension_semantics=("parallel", "parallel")),
        cost_estimate=cost,
    )(g_in, x_in, wg_k, wx_k, bs_k, wp_k, bp_k)

    if L_pad != L:
        psi_pad = psi_pad[:, :, :L]
        npsi_pad = npsi_pad[:, :, :L]
    return psi_pad, npsi_pad


def init_params(key, F_g, F_l, F_int):
    ks = jax.random.split(key, 12)
    p = {
        # Conv1d weights (Cout, Cin) -- kernel_size=1 squeezed away.
        "wg": jax.random.normal(ks[0], (F_int, F_g), jnp.float32) * 0.1,
        "bg": jax.random.normal(ks[1], (F_int,), jnp.float32) * 0.1,
        "wx": jax.random.normal(ks[2], (F_int, F_l), jnp.float32) * 0.1,
        "bx": jax.random.normal(ks[3], (F_int,), jnp.float32) * 0.1,
        "wp": jax.random.normal(ks[4], (1, F_int), jnp.float32) * 0.1,
        "bp": jax.random.normal(ks[5], (1,), jnp.float32) * 0.1,
        # BatchNorm1d params / running stats (eval-mode semantics).
        "gn_g_gamma": 1.0 + 0.1 * jax.random.normal(ks[6], (F_int,), jnp.float32),
        "gn_g_beta": 0.1 * jax.random.normal(ks[7], (F_int,), jnp.float32),
        "gn_g_mean": 0.05 * jax.random.normal(ks[8], (F_int,), jnp.float32),
        "gn_g_var": jnp.abs(jax.random.normal(ks[9], (F_int,), jnp.float32)) * 0.1 + 1.0,
        "gn_x_gamma": 1.0 + 0.1 * jax.random.normal(ks[10], (F_int,), jnp.float32),
        "gn_x_beta": 0.1 * jax.random.normal(ks[11], (F_int,), jnp.float32),
        "gn_x_mean": jnp.zeros((F_int,), jnp.float32),
        "gn_x_var": jnp.ones((F_int,), jnp.float32),
        "gn_p_gamma": jnp.ones((1,), jnp.float32),
        "gn_p_beta": jnp.zeros((1,), jnp.float32),
        "gn_p_mean": jnp.zeros((1,), jnp.float32),
        "gn_p_var": jnp.ones((1,), jnp.float32),
    }
    return p


def _reference(g, x, params):
    """Pure-JAX reference (eval-mode BN) for sanity checking."""
    def conv_bn(inp, w, b, gamma, beta, mean, var, eps=1e-5):
        # inp: (B, Cin, L); w: (Cout, Cin)
        z = jnp.einsum("oc,bcl->bol", w, inp) + b[None, :, None]
        return gamma[None, :, None] * (z - mean[None, :, None]) / jnp.sqrt(
            var[None, :, None] + eps) + beta[None, :, None]

    g1 = conv_bn(g, params["wg"], params["bg"], params["gn_g_gamma"], params["gn_g_beta"],
                 params["gn_g_mean"], params["gn_g_var"])
    x1 = conv_bn(x, params["wx"], params["bx"], params["gn_x_gamma"], params["gn_x_beta"],
                 params["gn_x_mean"], params["gn_x_var"])
    s = g1 + x1
    act = jnp.where(s >= 0, s, 0.2 * s)
    p = conv_bn(act, params["wp"], params["bp"], params["gn_p_gamma"], params["gn_p_beta"],
                params["gn_p_mean"], params["gn_p_var"])
    p = jax.nn.sigmoid(p)
    return p, 1.0 - p


if __name__ == "__main__":
    # Small shapes consistent with the module: g:(B, F_g, L), x:(B, F_l, L).
    B, F_g, F_l, F_int, L = 2, 8, 8, 16, 64

    key = jax.random.PRNGKey(0)
    k_g, k_x, k_p = jax.random.split(key, 3)
    g = jax.random.normal(k_g, (B, F_g, L), jnp.float32)
    x = jax.random.normal(k_x, (B, F_l, L), jnp.float32)
    params = init_params(k_p, F_g, F_l, F_int)

    psi_ref, npsi_ref = _reference(g, x, params)

    # Default path: bf16 streaming (HBM-bound regime -> ~2x less input traffic).
    psi, one_minus_psi = attention_block_forward(g, x, params)
    psi = jax.block_until_ready(psi)
    one_minus_psi = jax.block_until_ready(one_minus_psi)
    assert psi.shape == (B, 1, L) and one_minus_psi.shape == (B, 1, L)
    assert jnp.allclose(psi, psi_ref, atol=2e-2)
    assert jnp.allclose(one_minus_psi, npsi_ref, atol=2e-2)

    # Exact f32 streaming path for tight validation.
    psi32, npsi32 = attention_block_forward(g, x, params, input_dtype=jnp.float32)
    psi32 = jax.block_until_ready(psi32)
    npsi32 = jax.block_until_ready(npsi32)
    assert jnp.allclose(psi32, psi_ref, atol=1e-5, rtol=1e-5)
    assert jnp.allclose(npsi32, npsi_ref, atol=1e-5, rtol=1e-5)

    print("KERNEL_OK")
</pallas_src>

<mosaic_0001>
module attributes {stable_mosaic.version = 11 : i64} {
  func.func @_attention_block_kernel(%arg0: i32, %arg1: i32, %arg2: memref<1x8x128xbf16, #tpu.memory_space<vmem>>, %arg3: memref<1x8x128xbf16, #tpu.memory_space<vmem>>, %arg4: memref<16x8xbf16, #tpu.memory_space<vmem>>, %arg5: memref<16x8xbf16, #tpu.memory_space<vmem>>, %arg6: memref<16x1xf32, #tpu.memory_space<vmem>>, %arg7: memref<16x1xf32, #tpu.memory_space<vmem>>, %arg8: memref<1x1xf32, #tpu.memory_space<smem>>, %arg9: memref<1x1x128xf32, #tpu.memory_space<vmem>>, %arg10: memref<1x1x128xf32, #tpu.memory_space<vmem>>) attributes {dimension_semantics = [#tpu.dimension_semantics<parallel>, #tpu.dimension_semantics<parallel>], iteration_bounds = array<i64: 2, 1>, scalar_prefetch = 0 : i64, scratch_operands = 0 : i64, tpu.core_type = #tpu.core_type<tc>, window_params = [{transform_indices = @transform_0, window_bounds = array<i64: 1, 8, 128>}, {transform_indices = @transform_1, window_bounds = array<i64: 1, 8, 128>}, {pipeline_mode = #tpu.pipeline_mode<synchronous>, transform_indices = @transform_2, window_bounds = array<i64: 16, 8>}, {pipeline_mode = #tpu.pipeline_mode<synchronous>, transform_indices = @transform_3, window_bounds = array<i64: 16, 8>}, {pipeline_mode = #tpu.pipeline_mode<synchronous>, transform_indices = @transform_4, window_bounds = array<i64: 16, 1>}, {pipeline_mode = #tpu.pipeline_mode<synchronous>, transform_indices = @transform_5, window_bounds = array<i64: 16, 1>}, {transform_indices = @transform_6, window_bounds = array<i64: 1, 1>}, {transform_indices = @transform_7, window_bounds = array<i64: 1, 1, 128>}, {transform_indices = @transform_8, window_bounds = array<i64: 1, 1, 128>}]} {
    %c0 = arith.constant 0 : index
    %c0_0 = arith.constant 0 : index
    %0 = vector.load %arg4[%c0, %c0_0] : memref<16x8xbf16, #tpu.memory_space<vmem>>, vector<16x8xbf16>
    %c0_1 = arith.constant 0 : index
    %c0_2 = arith.constant 0 : index
    %c0_3 = arith.constant 0 : index
    %1 = vector.load %arg2[%c0_1, %c0_2, %c0_3] : memref<1x8x128xbf16, #tpu.memory_space<vmem>>, vector<1x8x128xbf16>
    %2 = vector.shape_cast %1 : vector<1x8x128xbf16> to vector<8x128xbf16>
    %cst = arith.constant dense<0.000000e+00> : vector<16x128xf32>
    %3 = tpu.matmul %0, %2, %cst {dimension_numbers = #tpu.dot_dimension_numbers<[1], [0], [0], [1], [0, 0, 1, 1], [], []>} : vector<16x8xbf16>, vector<8x128xbf16>, vector<16x128xf32> -> vector<16x128xf32>
    %c0_4 = arith.constant 0 : index
    %c0_5 = arith.constant 0 : index
    %4 = vector.load %arg5[%c0_4, %c0_5] : memref<16x8xbf16, #tpu.memory_space<vmem>>, vector<16x8xbf16>
    %c0_6 = arith.constant 0 : index
    %c0_7 = arith.constant 0 : index
    %c0_8 = arith.constant 0 : index
    %5 = vector.load %arg3[%c0_6, %c0_7, %c0_8] : memref<1x8x128xbf16, #tpu.memory_space<vmem>>, vector<1x8x128xbf16>
    %6 = vector.shape_cast %5 : vector<1x8x128xbf16> to vector<8x128xbf16>
    %cst_9 = arith.constant dense<0.000000e+00> : vector<16x128xf32>
    %7 = tpu.matmul %4, %6, %cst_9 {dimension_numbers = #tpu.dot_dimension_numbers<[1], [0], [0], [1], [0, 0, 1, 1], [], []>} : vector<16x8xbf16>, vector<8x128xbf16>, vector<16x128xf32> -> vector<16x128xf32>
    %8 = arith.addf %3, %7 : vector<16x128xf32>
    %c0_10 = arith.constant 0 : index
    %c0_11 = arith.constant 0 : index
    %9 = vector.load %arg6[%c0_10, %c0_11] : memref<16x1xf32, #tpu.memory_space<vmem>>, vector<16x1xf32>
    %10 = vector.broadcast %9 : vector<16x1xf32> to vector<16x128xf32>
    %11 = arith.addf %8, %10 : vector<16x128xf32>
    %cst_12 = arith.constant 2.000000e-01 : f32
    %12 = vector.broadcast %cst_12 : f32 to vector<16x128xf32>
    %13 = arith.mulf %12, %11 : vector<16x128xf32>
    %14 = arith.maximumf %11, %13 : vector<16x128xf32>
    %c0_13 = arith.constant 0 : index
    %c0_14 = arith.constant 0 : index
    %15 = vector.load %arg7[%c0_13, %c0_14] : memref<16x1xf32, #tpu.memory_space<vmem>>, vector<16x1xf32>
    %16 = vector.broadcast %15 : vector<16x1xf32> to vector<16x128xf32>
    %17 = arith.mulf %14, %16 : vector<16x128xf32>
    %cst_15 = arith.constant dense<0.000000e+00> : vector<128xf32>
    %18 = vector.multi_reduction <add>, %17, %cst_15 [0] : vector<16x128xf32> to vector<128xf32>
    %19 = vector.shape_cast %18 : vector<128xf32> to vector<1x128xf32>
    %c0_16 = arith.constant 0 : index
    %c0_17 = arith.constant 0 : index
    %20 = memref.load %arg8[%c0_16, %c0_17] : memref<1x1xf32, #tpu.memory_space<smem>>
    %21 = vector.broadcast %20 : f32 to vector<1x128xf32>
    %22 = arith.addf %19, %21 : vector<1x128xf32>
    %23 = arith.negf %22 : vector<1x128xf32>
    %24 = math.exp %23 : vector<1x128xf32>
    %cst_18 = arith.constant 1.000000e+00 : f32
    %25 = vector.broadcast %cst_18 : f32 to vector<1x128xf32>
    %26 = arith.addf %25, %24 : vector<1x128xf32>
    %27 = arith.divf %25, %26 : vector<1x128xf32>
    %c0_19 = arith.constant 0 : index
    %c0_20 = arith.constant 0 : index
    %c0_21 = arith.constant 0 : index
    %28 = vector.load %arg9[%c0_19, %c0_20, %c0_21] : memref<1x1x128xf32, #tpu.memory_space<vmem>>, vector<1x1x128xf32>
    %29 = vector.shape_cast %28 : vector<1x1x128xf32> to vector<1x128xf32>
    %30 = vector.shape_cast %27 : vector<1x128xf32> to vector<1x1x128xf32>
    tpu.vector_store %arg9[%c0_19, %c0_20, %c0_21], %30 {strides = array<i32>} : memref<1x1x128xf32, #tpu.memory_space<vmem>>, vector<1x1x128xf32>,
    %cst_22 = arith.constant 1.000000e+00 : f32
    %31 = vector.broadcast %cst_22 : f32 to vector<1x128xf32>
    %32 = arith.subf %31, %27 : vector<1x128xf32>
    %c0_23 = arith.constant 0 : index
    %c0_24 = arith.constant 0 : index
    %c0_25 = arith.constant 0 : index
    %33 = vector.load %arg10[%c0_23, %c0_24, %c0_25] : memref<1x1x128xf32, #tpu.memory_space<vmem>>, vector<1x1x128xf32>
    %34 = vector.shape_cast %33 : vector<1x1x128xf32> to vector<1x128xf32>
    %35 = vector.shape_cast %32 : vector<1x128xf32> to vector<1x1x128xf32>
    tpu.vector_store %arg10[%c0_23, %c0_24, %c0_25], %35 {strides = array<i32>} : memref<1x1x128xf32, #tpu.memory_space<vmem>>, vector<1x1x128xf32>,
    return
  }
  func.func @transform_0(%arg0: i32, %arg1: i32) -> (i32, i32, i32) {
    %c0_i32 = arith.constant 0 : i32
    %c0_i32_0 = arith.constant 0 : i32
    return %arg0, %c0_i32, %arg1 : i32, i32, i32
  }
  func.func @transform_1(%arg0: i32, %arg1: i32) -> (i32, i32, i32) {
    %c0_i32 = arith.constant 0 : i32
    %c0_i32_0 = arith.constant 0 : i32
    return %arg0, %c0_i32, %arg1 : i32, i32, i32
  }
  func.func @transform_2(%arg0: i32, %arg1: i32) -> (i32, i32) {
    %c0_i32 = arith.constant 0 : i32
    %c0_i32_0 = arith.constant 0 : i32
    %c0_i32_1 = arith.constant 0 : i32
    return %c0_i32, %c0_i32_0 : i32, i32
  }
  func.func @transform_3(%arg0: i32, %arg1: i32) -> (i32, i32) {
    %c0_i32 = arith.constant 0 : i32
    %c0_i32_0 = arith.constant 0 : i32
    %c0_i32_1 = arith.constant 0 : i32
    return %c0_i32, %c0_i32_0 : i32, i32
  }
  func.func @transform_4(%arg0: i32, %arg1: i32) -> (i32, i32) {
    %c0_i32 = arith.constant 0 : i32
    %c0_i32_0 = arith.constant 0 : i32
    %c0_i32_1 = arith.constant 0 : i32
    return %c0_i32, %c0_i32_0 : i32, i32
  }
  func.func @transform_5(%arg0: i32, %arg1: i32) -> (i32, i32) {
    %c0_i32 = arith.constant 0 : i32
    %c0_i32_0 = arith.constant 0 : i32
    %c0_i32_1 = arith.constant 0 : i32
    return %c0_i32, %c0_i32_0 : i32, i32
  }
  func.func @transform_6(%arg0: i32, %arg1: i32) -> (i32, i32) {
    %c0_i32 = arith.constant 0 : i32
    %c0_i32_0 = arith.constant 0 : i32
    %c0_i32_1 = arith.constant 0 : i32
    return %c0_i32, %c0_i32_0 : i32, i32
  }
  func.func @transform_7(%arg0: i32, %arg1: i32) -> (i32, i32, i32) {
    %c0_i32 = arith.constant 0 : i32
    %c0_i32_0 = arith.constant 0 : i32
    return %arg0, %c0_i32, %arg1 : i32, i32, i32
  }
  func.func @transform_8(%arg0: i32, %arg1: i32) -> (i32, i32, i32) {
    %c0_i32 = arith.constant 0 : i32
    %c0_i32_0 = arith.constant 0 : i32
    return %arg0, %c0_i32, %arg1 : i32, i32, i32
  }
}

</mosaic_0001>

<bundles_post_ra>
// kernel: tpu_custom_call.1
= control target key start
LH: loop header
LB: loop body
LE: loop exit
PB: predicated region body
PF: predicated region fallthrough
CT: control target
= control target key end

     0   :  { %s1112_s0 = inlined_call_operand.vmem [shape: bf16[2,8,128], index: 0, kind: input, shape index: {}]   ;;  %s1113_s1 = inlined_call_operand.vmem [shape: bf16[2,8,128], index: 1, kind: input, shape index: {}]   ;;  %s1114_s2 = inlined_call_operand.vmem [shape: bf16[16,8], index: 2, kind: input, shape index: {}]   ;;  %s1115_s3 = inlined_call_operand.vmem [shape: bf16[16,8], index: 3, kind: input, shape index: {}]   ;;  %s1116_s4 = inlined_call_operand.vmem [shape: f32[16,1], index: 4, kind: input, shape index: {}]   ;;  %s1117_s5 = inlined_call_operand.vmem [shape: f32[16,1], index: 5, kind: input, shape index: {}]   ;;  %s1118_s6 = inlined_call_operand.<no memory space> [shape: f32[1,1], index: 6, kind: input, shape index: {}]   ;;  %s1119_s7 = inlined_call_operand.hbm [shape: f32[2,1,128], index: 7, kind: output, shape index: {0}]   ;;  %s1120_s8 = inlined_call_operand.hbm [shape: f32[2,1,128], index: 8, kind: output, shape index: {1}]  }
   0x1   :  { %14 = sst [smem:[#allocation2]] %s1118_s6 }
   0x2   :  { %15 = vsyncpa [#allocation4], 0 }
   0x3   :  { %17 = vsyncpa [#allocation4 + $0x1], 0 }
   0x4   :  { %18 = vsyncpa [#allocation6], 0 }
   0x5   :  { %20 = vsyncpa [#allocation6 + $0x1], 0  ;;  %s941_s29 = smov 0   ;;  %s943_s30 = smov 0  }
   0x6   :  { %s945_s9 = smov 0   ;;  %s947_s10 = smov 0  }
   0x7   :  { %s949_s11 = smov 0   ;;  %s951_s12 = smov 0  }
   0x8 LB: > { %s673_s6 = sadd.s32 4294967295, %s886_s12   ;;  %s674_s13 = sadd.s32 4294967294, %s886_s12   ;;  %s886_s12 = sphi %s951_s12, %s26_s12   ;;  %s882_s11 = sphi %s949_s11, %s1129_s11   ;;  %s878_s10 = sphi %s947_s10, %s1128_s10   ;;  %s874_s9 = sphi %s945_s9, %s1127_s9   ;;  %s870_s30 = sphi %s943_s30, %s1126_s30   ;;  %s866_s29 = sphi %s941_s29, %s1125_s29  }
   0x9   : > { %s38_s14 = sadd.s32 1, %s882_s11  ;;  %s208_s15 = sadd.s32 1, %s874_s9 }
   0xa   : > { %p40_p0 = scmp.ge.s32.totalorder %s38_s14, 2  ;;  %p218_p1 = scmp.ne.s32.totalorder %s874_s9, %s870_s30 }
   0xb   : > { %p219_p2 = scmp.eq.s32.totalorder %s673_s6, 1  ;;  %p224_p3 = scmp.ne.s32.totalorder %s870_s30, %s866_s29 }
   0xc   : > { %s1131_s14 = smov (%p40_p0, %s38_s14), 0  ;;  %p225_p5 = scmp.eq.s32.totalorder %s674_s13, 1 }
   0xd   : > { %p981_p4 = por %p219_p2, %p218_p1  ;;  %s203_s17 = ssub.s32 %s882_s11, %s1131_s14 }
   0xe   : > { %p677_p6 = scmp.ge.s32.totalorder %s886_s12, 1  ;;  %p206_p7 = scmp.eq.s32.totalorder %s203_s17, 0 }
   0xf   : > { %p988_p8 = por %p225_p5, %p224_p3  ;;  %p306_p9 = scmp.lt.s32.totalorder %s886_s12, 3 }
  0x10   : > { %s994_s19 = scalar_select %p206_p7, %s874_s9, %s208_s15  }
  0x11   : > { %p307_p10 = pnand %p677_p6, %p306_p9 }
  0x12   : > { %p352_p11 = scmp.lt.s32.totalorder (!%p307_p10), %s878_s10, 1  ;;  %v888_v0 = vmov (!%p307_p10), 0.0   ;;  %vm889_vm0 = vmmov (!%p307_p10), 0   ;;  %v479_v1 = vld [vmem:[%s1116_s4] sm:$0xff] (!%p307_p10)  ;;  %v890_v2 = vmov (!%p307_p10), 0   ;;  %vm382_vm1 = vcmask (!%p307_p10), 1043456  }
  0x13   : > { %310 = sbr.rel (%p307_p10) target bundleno = 339 (0x153), region = 48  ;;  %693 = vmatprep.subr.bf16.mxu0 (!%p307_p10), %v888_v0  ;;  %699 = vmatprep.subr.bf16.mxu1 (!%p307_p10), %v888_v0  ;;  %v497_v3 = vld [vmem:[%s1117_s5] sm:$0xff] (!%p307_p10)  ;;  %v480_v4 = vld [vmem:[%s1116_s4 + $0x8] sm:$0xff] (!%p307_p10)  ;;  %vm378_vm2 = vcmask (!%p307_p10), 64512   ;;  %s685_s6 = sshll.u32 (!%p307_p10), %s878_s10, 4 }
  0x14   : > { %695 = vmatprep.mubr.msk.bf16.mxu0 (!%p307_p10), %vm889_vm0, %v888_v0  ;;  %701 = vmatprep.mubr.msk.bf16.mxu1 (!%p307_p10), %vm889_vm0, %v888_v0  ;;  %v498_v7 = vld [vmem:[%s1117_s5 + $0x8] sm:$0xff] (!%p307_p10)  ;;  %v770_v10 = vld [vmem:[%s1115_s3] sm:$0xff] (!%p307_p10)   ;;  %s1040_s26 = scalar_lea.hbm (!%p307_p10), %s1120_s8, %s685_s6  ;;  %s891_s22 = smov (!%p307_p10), [#allocation3]  }
  0x15   : > { %768 = vset.pattern.permute.xlu0 (!%p307_p10), %v890_v2  ;;  %769 = vset.pattern.permute.xlu1 (!%p307_p10), %v890_v2  ;;  %v771_v11 = vld [vmem:[%s1114_s2] sm:$0xff] (!%p307_p10)   ;;  %s780_s23 = sshll.u32 (!%p307_p10), %s891_s22, 4  ;;  %s781_s23 = int_to_ptr.vmem [resolvable:$false] %s780_s23 }
  0x16   : > { %483 = vperm.xlu0 (!%p307_p10), %768, %v479_v1   ;;  %501 = vperm.xlu1 (!%p307_p10), %769, %v497_v3  }
  0x1a   : > { %s353_s20 = scalar_select %p352_p11, %s878_s10, 1  ;;  %488 = vperm.xlu0 %768, %v480_v4   ;;  %506 = vperm.xlu1 %769, %v498_v7  }
  0x1c   : > { %s678_s25 = sshll.u32 %s353_s20, 2  ;;  %s1033_s20 = scalar_lea.hbm %s1119_s7, %s685_s6 }
  0x1d   : > { %s365_s28 = scalar_lea.vmem %s1113_s1, %s678_s25  ;;  %s358_s15 = scalar_lea.vmem %s1112_s0, %s678_s25 }
  0x1e   : > { %v372_v5 = vld [vmem:[%s365_s28] sm:$0xf]  ;;  %s518_s25 = sld [smem:[#allocation2]]  ;;  %s1023_s28 = sand.u32 1, %s870_s30  }
  0x1f   : > { %v369_v6 = vld [vmem:[%s358_s15] sm:$0xf]  ;;  %v384_v8 = vsel %vm382_vm1, %v372_v5, 0  ;;  %s345_s13 = scalar_lea.vmem [#allocation3], %s1023_s28  ;;  %s1121_s17 = scalar_lea.vmem [#allocation5], %s1023_s28 }
  0x20   : > { %v436_v9 = vsel %vm382_vm1, %v369_v6, 0  ;;  %694 = vmatpush3.bf16.msra.mxu0 %v384_v8  ;;  %s548_s15 = sshll.u32 %s345_s13, 4  ;;  %s562_s21 = sshll.u32 %s1121_s17, 4  ;;  %s1035_s15 = int_to_ptr.vmem [resolvable:$true] %s548_s15  ;;  %s1042_s21 = int_to_ptr.vmem [resolvable:$true] %s562_s21 }
  0x21   : > { %700 = vmatpush3.bf16.msra.mxu1 %v436_v9  ;;  %s531_s27 = scalar_lea.sflag [#allocation4], %s1023_s28  ;;  %s782_s17 = scalar_lea.vmem %s781_s23, 32 }
  0x22   : > { %p783_p1 = scmp.lt.s32.totalorder %s1035_s15, %s781_s23 }
  0x23   : > { %696 = vmatmul.mubr.msk.bf16.vlgmr.msra.gmra.mrb[0].mxu0 %vm378_vm2, %v770_v10 }
  0x24   : > { %702 = vmatmul.mubr.msk.bf16.vlgmr.msra.gmra.mrb[0].mxu1 %vm378_vm2, %v771_v11  ;;  %v519_v40 = vstv %s518_s25  ;;  %s776_s25 = scalar_lea.vmem %s1035_s15, 16 }
  0x25   : > { %p777_p12 = scmp.ne.s32.totalorder %s1035_s15, %s776_s25  ;;  %p784_p2 = scmp.lt.s32.totalorder %s782_s17, %s776_s25 }
  0x27   : > { %p778_p13 = pnand %p777_p12, %p981_p4  ;;  %p785_p3 = por %p784_p2, %p783_p1 }
  0x29   : > { %p779_p0 = pneg %p778_p13 }
  0x2b   : > { %p786_p5 = pnand %p785_p3, %p779_p0 }
  0x95   : > { %v484_v12 = vpop.permute.xlu0 %483  ;;  %v502_v25 = vpop.permute.xlu1 %501 }
  0x99   : > { %v489_v24 = vpop.permute.xlu0 %488  ;;  %v507_v31 = vpop.permute.xlu1 %506 }
  0xf6   : > { %v420_v13 = vpop.f32.mrb[0].mxu0 }
  0xf7   : > { %v472_v14 = vpop.f32.mrb[0].mxu1  ;;  %v697_v16 = vpop.f32.mrb[1].mxu0 }
  0xf8   : > { %v473_v15 = vadd.f32 %v472_v14, %v420_v13  ;;  %v703_v17 = vpop.f32.mrb[1].mxu1  ;;  %v423_v18 = vpop.f32.mrb[2].mxu0 }
  0xf9   : > { %v475_v19 = vpop.f32.mrb[2].mxu1  ;;  %v698_v22 = vpop.f32.mrb[3].mxu0 }
  0xfa   : > { %v491_v20 = vadd.f32 %v484_v12, %v473_v15  ;;  %v476_v21 = vadd.f32 %v475_v19, %v423_v18  ;;  %v704_v23 = vpop.f32.mrb[3].mxu1 }
  0xfc   : > { %v493_v26 = vmul.f32 0.2, %v491_v20  ;;  %v492_v27 = vadd.f32 %v489_v24, %v476_v21 }
  0xfe   : > { %v495_v28 = vmax.f32 %v491_v20, %v493_v26  ;;  %v494_v29 = vmul.f32 0.2, %v492_v27 }
 0x100   : > { %v496_v30 = vmax.f32 %v492_v27, %v494_v29  ;;  %v509_v32 = vmul.f32 %v502_v25, %v495_v28 }
 0x102   : > { %v510_v33 = vmul.f32 %v507_v31, %v496_v30 }
 0x104   : > { %v511_v34 = vadd.f32 %v510_v33, %v509_v32 }
 0x106   : > { %v512_v35 = vrot.slane %v511_v34, 4 }
 0x108   : > { %v513_v36 = vadd.f32 %v512_v35, %v511_v34 }
 0x10a   : > { %v514_v37 = vrot.slane %v513_v36, 2 }
 0x10c   : > { %v515_v38 = vadd.f32 %v514_v37, %v513_v36 }
 0x10e   : > { %v516_v39 = vrot.slane %v515_v38, 1 }
 0x110   : > { %v517_v41 = vadd.f32 %v516_v39, %v515_v38 }
 0x112   : > { %v520_v42 = vadd.f32 %v519_v40, %v517_v41 }
 0x114   : > { %v684_v43 = vmul.f32 -1.442695, %v520_v42 }
 0x116   : > { %772 = vpow2.f32 %v684_v43 }
 0x120   : > { %v773_v44 = vpop.eup %772 }
 0x121   : > { %v524_v45 = vadd.f32 1.0, %v773_v44 }
 0x123   : > { %774 = vrcp.f32 %v524_v45 }
 0x12d   : > { %v775_v46 = vpop.eup %774 }
 0x12e   : > { %527 = vst [vmem:[%s345_s13] sm:$0x1] %v775_v46  ;;  %v528_v47 = vsub.f32 1.0, %v775_v46 }
 0x12f   : > { %789 = shalt.err (!%p786_p5)
}
 0x130   : > { %s790_s6 = scalar_lea.hbm %s1033_s20, 16  ;;  %s794_s10 = scalar_lea.hbm %s1119_s7, 32 }
 0x131   : > { %p791_p6 = scmp.ne.s32.totalorder %s1033_s20, %s790_s6  ;;  %p795_p10 = scmp.lt.u32.totalorder %s1033_s20, %s1119_s7 }
 0x132   : > { %p796_p11 = scmp.lt.u32.totalorder %s794_s10, %s790_s6  ;;  %p798_p13 = scmp.lt.u32.totalorder %s790_s6, %s1033_s20 }
 0x133   : > { %p792_p7 = pnand %p791_p6, %p981_p4 }
 0x134   : > { %p797_p12 = por %p796_p11, %p795_p10 }
 0x135   : > { %p793_p9 = pneg %p792_p7 }
 0x136   : > { %p799_p0 = por %p798_p13, %p797_p12 }
 0x138   : > { %p800_p1 = pnand %p799_p0, %p793_p9 }
 0x13a   : > { %803 = shalt.err (!%p800_p1)
}
 0x13b   : > { %705 = dma.vmem_to_hbm [thread:$0]  (%p981_p4), %s1035_s15, 16, %s1033_s20, %s531_s27  }
 0x13c   : > { %s1124_s17 = scalar_lea.vmem [#allocation5], %s1023_s28  ;;  %s535_s25 = scalar_lea.sflag [#allocation6], %s1023_s28 }
 0x13d   : > { %529 = vst [vmem:[%s1124_s17] sm:$0x1] %v528_v47  ;;  %s804_s13 = scalar_lea.vmem %s1042_s21, 16  ;;  %s892_s6 = smov [#allocation5]  }
 0x13e   : > { %p805_p2 = scmp.ne.s32.totalorder %s1042_s21, %s804_s13  ;;  %s808_s24 = sshll.u32 %s892_s6, 4  ;;  %s809_s24 = int_to_ptr.vmem [resolvable:$false] %s808_s24 }
 0x13f   : > { %s810_s10 = scalar_lea.vmem %s809_s24, 32  ;;  %p811_p6 = scmp.lt.s32.totalorder %s1042_s21, %s809_s24 }
 0x140   : > { %p806_p3 = pnand %p805_p2, %p981_p4  ;;  %p812_p7 = scmp.lt.s32.totalorder %s810_s10, %s804_s13 }
 0x142   : > { %p807_p5 = pneg %p806_p3  ;;  %p813_p9 = por %p812_p7, %p811_p6 }
 0x144   : > { %p814_p10 = pnand %p813_p9, %p807_p5 }
 0x146   : > { %817 = shalt.err (!%p814_p10)
}
 0x147   : > { %s818_s28 = scalar_lea.hbm %s1040_s26, 16  ;;  %s822_s27 = scalar_lea.hbm %s1120_s8, 32 }
 0x148   : > { %p819_p11 = scmp.ne.s32.totalorder %s1040_s26, %s818_s28  ;;  %p823_p0 = scmp.lt.u32.totalorder %s1040_s26, %s1120_s8 }
 0x149   : > { %p824_p1 = scmp.lt.u32.totalorder %s822_s27, %s818_s28  ;;  %p826_p3 = scmp.lt.u32.totalorder %s818_s28, %s1040_s26 }
 0x14a   : > { %p820_p12 = pnand %p819_p11, %p981_p4 }
 0x14b   : > { %p825_p2 = por %p824_p1, %p823_p0 }
 0x14c   : > { %p821_p13 = pneg %p820_p12 }
 0x14d   : > { %p827_p5 = por %p826_p3, %p825_p2 }
 0x14f   : > { %p828_p6 = pnand %p827_p5, %p821_p13 }
 0x151   : > { %831 = shalt.err (!%p828_p6)
}
 0x152   : > { %706 = dma.vmem_to_hbm [thread:$0]  (%p981_p4), %s1042_s21, 16, %s1040_s26, %s535_s25  }
 0x153 PF: > { %p716_p7 = scmp.ge.s32.totalorder %s886_s12, 2  ;;  %s574_s17 = sand.u32 1, %s866_s29  }
 0x154   : > { %s575_s13 = scalar_lea.sflag [#allocation4], %s574_s17 }
 0x155   : > { %p710_p9 = pnand %p716_p7, %p988_p8 }
 0x157   : > { %857 = dma.done.wait (!%p710_p9), %s575_s13, 16  }
 0x158   : > { %859 = vsyncadd (!%p710_p9), %s575_s13, 4294967280  ;;  %s583_s6 = scalar_lea.sflag [#allocation6], %s574_s17 }
 0x159   : > { %861 = dma.done.wait (!%p710_p9), %s583_s6, 16  }
 0x15a   : > { %863 = vsyncadd (!%p710_p9), %s583_s6, 4294967280  ;;  %s26_s12 = sadd.s32 1, %s886_s12   ;;  %s1125_s29 = smov %s870_s30 }
 0x15b   : > { %p23_p10 = scmp.ge.s32.totalorder %s26_s12, 4   ;;  %s1126_s30 = smov %s874_s9 }
 0x15c   : > { %s1127_s9 = smov %s994_s19  ;;  %s1128_s10 = smov %s882_s11 }
 0x15d   : > { %s1129_s11 = smov %s1131_s14  ;;  %25 = sbr.rel (!%p23_p10) target bundleno = 8 (0x8), region = 103 }
 0x164   :  { %587 = vsyncpa [#allocation4], 1 }
 0x165   :  { %589 = vsyncpa [#allocation4 + $0x1], 1 }
 0x166   :  { %590 = vsyncpa [#allocation6], 1 }
 0x167   :  { %592 = vsyncpa [#allocation6 + $0x1], 1 }

</bundles_post_ra>
